<compile_context>
chip_gen: v7x
topology: tpu7x:2x2x1
jax: 0.10.0
libtpu: 0.0.40
codegen_flags: <defaults>
</compile_context>

<pallas_src>
import functools

import jax
import jax.numpy as jnp
import numpy as np
from jax import lax
from jax.experimental import pallas as pl
from jax.experimental.pallas import tpu as pltpu


def _bottleneck_kernel(x_ref, w1_ref, b1_ref, wdw_ref, b2_ref, w3_ref, b3_ref,
                       out_ref, *, H, W, stride, residual):
    # Per grid step (one batch element), channels-first flattened layout:
    #   x_ref   : (Cin,  H*W)   f32   input image (lane axis = H*W)
    #   w1_ref  : (Ct,   Cin)   bf16  1x1 expand weights, BN1 scale folded in
    #   b1_ref  : (Ct,   1)     f32   BN1 bias
    #   wdw_ref : (Ct,   9)     f32   3x3 depthwise weights (col = 3*di+dj), BN2 scale folded
    #   b2_ref  : (Ct,   1)     f32   BN2 bias
    #   w3_ref  : (Cout, Ct)    bf16  1x1 project weights, BN3 scale folded in
    #   b3_ref  : (Cout, 1)     f32   BN3 bias
    #   out_ref : (Cout, Ho*Wo) f32
    HW = x_ref.shape[-1]
    Ct = w1_ref.shape[0]

    x_cf = x_ref[...]                                         # (Cin, H*W) f32

    # ---- 1x1 expand conv (MXU, bf16 operands / f32 accumulation) + bias + ReLU6 ----
    h1 = jnp.dot(w1_ref[...], x_cf.astype(jnp.bfloat16),
                 preferred_element_type=jnp.float32)          # (Ct, H*W)
    h1 = jnp.clip(h1 + b1_ref[...], 0.0, 6.0)

    # ---- 3x3 depthwise conv, zero padding 1, computed dense (stride 1) ----
    # Each tap is a static lane shift of the row-major flattened spatial axis with zero
    # fill; a column mask kills values that wrapped across a row edge.  No pad scratch,
    # no misaligned stores; shifts/selects ride the XLU/VPU while the MXU is idle.
    col = lax.broadcasted_iota(jnp.int32, (1, HW), 1) % W
    left_ok = col != 0            # reading column j-1 is valid
    right_ok = col != (W - 1)     # reading column j+1 is valid
    wdw = wdw_ref[...]                                        # (Ct, 9) f32

    acc = jnp.zeros((Ct, HW), jnp.float32)
    for di in range(3):
        for dj in range(3):
            off = (di - 1) * W + (dj - 1)
            if off > 0:
                tap = jnp.concatenate(
                    [h1[:, off:], jnp.zeros((Ct, off), jnp.float32)], axis=1)
            elif off < 0:
                tap = jnp.concatenate(
                    [jnp.zeros((Ct, -off), jnp.float32), h1[:, :off]], axis=1)
            else:
                tap = h1
            if dj == 0:
                tap = jnp.where(left_ok, tap, 0.0)
            elif dj == 2:
                tap = jnp.where(right_ok, tap, 0.0)
            k = 3 * di + dj
            acc = acc + tap * wdw[:, k:k + 1]
    act = jnp.clip(acc + b2_ref[...], 0.0, 6.0)               # (Ct, H*W)

    # ---- stride handling: one-shot subsample via a constant 0/1 selection matmul ----
    act_bf = act.astype(jnp.bfloat16)
    if stride != 1:
        Ho = (H - 1) // stride + 1
        Wo = (W - 1) // stride + 1
        p = lax.broadcasted_iota(jnp.int32, (HW, Ho * Wo), 0)
        q = lax.broadcasted_iota(jnp.int32, (HW, Ho * Wo), 1)
        src = (stride * (q // Wo)) * W + stride * (q % Wo)
        select = (p == src).astype(jnp.bfloat16)              # (H*W, Ho*Wo)
        act_bf = jnp.dot(act_bf, select,
                         preferred_element_type=jnp.float32).astype(jnp.bfloat16)

    # ---- 1x1 project conv (MXU) + BN3 bias (+ residual) ----
    h3 = jnp.dot(w3_ref[...], act_bf,
                 preferred_element_type=jnp.float32)          # (Cout, Ho*Wo)
    h3 = h3 + b3_ref[...]
    if residual:
        h3 = h3 + x_cf                                        # f32 residual, exact
    out_ref[...] = h3.astype(out_ref.dtype)                   # lane-dense store


def linear_bottleneck(x_nchw, params, *, stride=1):
    """Runs LinearBottleneck.forward. Input/output are NCHW like PyTorch."""
    N, Cin, H, W = x_nchw.shape
    w1, s1, b1 = params["w1"], params["s1"], params["b1"]
    wdw, s2, b2 = params["wdw"], params["s2"], params["b2"]
    w3, s3, b3 = params["w3"], params["s3"], params["b3"]
    Ct = w1.shape[1]
    Cout = w3.shape[1]
    Ho = (H - 1) // stride + 1
    Wo = (W - 1) // stride + 1
    residual = (stride == 1 and Cin == Cout)

    # One-time constant folds (tiny tensors): BN scales into the weights, bf16 MXU weights.
    w1_k = (w1 * s1).T.astype(jnp.bfloat16)                    # (Ct, Cin)
    b1_k = b1.reshape(-1, 1).astype(jnp.float32)               # (Ct, 1)
    wdw_k = (wdw * s2.reshape(1, 1, Ct)).reshape(9, Ct).T.astype(jnp.float32)  # (Ct, 9)
    b2_k = b2.reshape(-1, 1).astype(jnp.float32)               # (Ct, 1)
    w3_k = (w3 * s3).T.astype(jnp.bfloat16)                    # (Cout, Ct)
    b3_k = b3.reshape(-1, 1).astype(jnp.float32)               # (Cout, 1)

    # NCHW -> (N, C, H*W) is a free (contiguous) reshape; no transposes on either side.
    x_flat = x_nchw.reshape(N, Cin, H * W)

    kernel = functools.partial(_bottleneck_kernel, H=H, W=W, stride=stride,
                               residual=residual)

    out_flat = pl.pallas_call(
        kernel,
        out_shape=jax.ShapeDtypeStruct((N, Cout, Ho * Wo), jnp.float32),
        grid=(N,),
        in_specs=[
            pl.BlockSpec((None, Cin, H * W), lambda n: (n, 0, 0)),
            pl.BlockSpec((Ct, Cin), lambda n: (0, 0)),
            pl.BlockSpec((Ct, 1), lambda n: (0, 0)),
            pl.BlockSpec((Ct, 9), lambda n: (0, 0)),
            pl.BlockSpec((Ct, 1), lambda n: (0, 0)),
            pl.BlockSpec((Cout, Ct), lambda n: (0, 0)),
            pl.BlockSpec((Cout, 1), lambda n: (0, 0)),
        ],
        out_specs=pl.BlockSpec((None, Cout, Ho * Wo), lambda n: (n, 0, 0)),
        compiler_params=pltpu.CompilerParams(
            dimension_semantics=("parallel",),
            vmem_limit_bytes=32 * 1024 * 1024),
    )(x_flat, w1_k, b1_k, wdw_k, b2_k, w3_k, b3_k)

    return out_flat.reshape(N, Cout, Ho, Wo)                   # already NCHW


def _fold_bn(gamma, beta, mean, var, eps=1e-5):
    scale = gamma / jnp.sqrt(var + eps)
    bias = beta - mean * scale
    return scale.reshape(1, -1), bias.reshape(1, -1)


def make_params(key, inplanes, outplanes, t):
    """Deterministic synthetic parameters matching the PyTorch module shapes.

    conv1.weight (Ct,Cin,1,1) is stored transposed as w1 (Cin,Ct);
    conv2.weight (Ct,1,3,3)   is stored as wdw (3,3,Ct);
    conv3.weight (Cout,Ct,1,1) is stored transposed as w3 (Ct,Cout).
    BatchNorm params are folded to per-channel scale/bias (inference mode).
    """
    Ct = inplanes * t
    ks = jax.random.split(key, 12)
    w1 = jax.random.normal(ks[0], (inplanes, Ct), jnp.float32) * 0.1
    wdw = jax.random.normal(ks[1], (3, 3, Ct), jnp.float32) * 0.1
    w3 = jax.random.normal(ks[2], (Ct, outplanes), jnp.float32) * 0.1

    def bn(kg, kb, km, kv, c):
        gamma = 0.5 + jax.random.uniform(kg, (c,), jnp.float32)
        beta = jax.random.normal(kb, (c,), jnp.float32) * 0.1
        mean = jax.random.normal(km, (c,), jnp.float32) * 0.1
        var = 0.5 + jax.random.uniform(kv, (c,), jnp.float32)
        return _fold_bn(gamma, beta, mean, var)

    s1, b1 = bn(ks[3], ks[4], ks[5], ks[6], Ct)
    s2, b2 = bn(ks[7], ks[8], ks[9], ks[10], Ct)
    kk = jax.random.split(ks[11], 4)
    s3, b3 = bn(kk[0], kk[1], kk[2], kk[3], outplanes)
    return dict(w1=w1, s1=s1, b1=b1, wdw=wdw, s2=s2, b2=b2,
                w3=w3, s3=s3, b3=b3)


def _reference(x_nchw, params, *, stride=1):
    """Pure-JAX f32 reference (NHWC internally) for correctness checking."""
    N, Cin, H, W = x_nchw.shape
    w1, s1, b1 = params["w1"], params["s1"], params["b1"]
    wdw, s2, b2 = params["wdw"], params["s2"], params["b2"]
    w3, s3, b3 = params["w3"], params["s3"], params["b3"]
    Ct = w1.shape[1]
    Cout = w3.shape[1]

    x = jnp.transpose(x_nchw, (0, 2, 3, 1))
    h = jnp.einsum("nhwc,cd->nhwd", x, w1)
    h = jnp.clip(h * s1.reshape(1, 1, 1, Ct) + b1.reshape(1, 1, 1, Ct), 0., 6.)
    h = lax.conv_general_dilated(
        h, wdw.reshape(3, 3, 1, Ct), window_strides=(stride, stride),
        padding=((1, 1), (1, 1)),
        dimension_numbers=("NHWC", "HWIO", "NHWC"),
        feature_group_count=Ct)
    h = jnp.clip(h * s2.reshape(1, 1, 1, Ct) + b2.reshape(1, 1, 1, Ct), 0., 6.)
    o = jnp.einsum("nhwc,cd->nhwd", h, w3)
    o = o * s3.reshape(1, 1, 1, Cout) + b3.reshape(1, 1, 1, Cout)
    if stride == 1 and Cin == Cout:
        o = o + x
    return jnp.transpose(o, (0, 3, 1, 2))


if __name__ == "__main__":
    # Small shapes: batch=2, inplanes=4, spatial=16x16, expansion t=6.
    N, C, H, W = 2, 4, 16, 16
    t = 6

    key = jax.random.PRNGKey(0)
    kx, kp1, kp2 = jax.random.split(key, 3)
    x = jax.random.normal(kx, (N, C, H, W), jnp.float32)

    # Case 1: stride=1, inplanes == outplanes (residual path active).
    params1 = make_params(kp1, inplanes=C, outplanes=C, t=t)
    out1 = jax.block_until_ready(linear_bottleneck(x, params1, stride=1))
    ref1 = jax.block_until_ready(_reference(x, params1, stride=1))
    np.testing.assert_allclose(np.asarray(out1), np.asarray(ref1),
                               rtol=2e-2, atol=2e-2)
    assert out1.shape == (N, C, H, W)

    # Case 2: stride=2 with a channel change (no residual).
    params2 = make_params(kp2, inplanes=C, outplanes=8, t=t)
    out2 = jax.block_until_ready(linear_bottleneck(x, params2, stride=2))
    ref2 = jax.block_until_ready(_reference(x, params2, stride=2))
    np.testing.assert_allclose(np.asarray(out2), np.asarray(ref2),
                               rtol=2e-2, atol=2e-2)
    assert out2.shape == (N, 8, H // 2, W // 2)

    print("KERNEL_OK")
</pallas_src>

<mosaic_0001>
module attributes {stable_mosaic.version = 11 : i64} {
  func.func @_bottleneck_kernel(%arg0: i32, %arg1: memref<1x4x256xf32, #tpu.memory_space<vmem>>, %arg2: memref<24x4xbf16, #tpu.memory_space<vmem>>, %arg3: memref<24x1xf32, #tpu.memory_space<vmem>>, %arg4: memref<24x9xf32, #tpu.memory_space<vmem>>, %arg5: memref<24x1xf32, #tpu.memory_space<vmem>>, %arg6: memref<4x24xbf16, #tpu.memory_space<vmem>>, %arg7: memref<4x1xf32, #tpu.memory_space<vmem>>, %arg8: memref<1x4x256xf32, #tpu.memory_space<vmem>>) attributes {dimension_semantics = [#tpu.dimension_semantics<parallel>], iteration_bounds = array<i64: 2>, scalar_prefetch = 0 : i64, scratch_operands = 0 : i64, tpu.core_type = #tpu.core_type<tc>, window_params = [{transform_indices = @transform_0, window_bounds = array<i64: 1, 4, 256>}, {pipeline_mode = #tpu.pipeline_mode<synchronous>, transform_indices = @transform_1, window_bounds = array<i64: 24, 4>}, {pipeline_mode = #tpu.pipeline_mode<synchronous>, transform_indices = @transform_2, window_bounds = array<i64: 24, 1>}, {pipeline_mode = #tpu.pipeline_mode<synchronous>, transform_indices = @transform_3, window_bounds = array<i64: 24, 9>}, {pipeline_mode = #tpu.pipeline_mode<synchronous>, transform_indices = @transform_4, window_bounds = array<i64: 24, 1>}, {pipeline_mode = #tpu.pipeline_mode<synchronous>, transform_indices = @transform_5, window_bounds = array<i64: 4, 24>}, {pipeline_mode = #tpu.pipeline_mode<synchronous>, transform_indices = @transform_6, window_bounds = array<i64: 4, 1>}, {transform_indices = @transform_7, window_bounds = array<i64: 1, 4, 256>}]} {
    %c0 = arith.constant 0 : index
    %c0_0 = arith.constant 0 : index
    %c0_1 = arith.constant 0 : index
    %0 = vector.load %arg1[%c0, %c0_0, %c0_1] : memref<1x4x256xf32, #tpu.memory_space<vmem>>, vector<1x4x256xf32>
    %1 = vector.shape_cast %0 : vector<1x4x256xf32> to vector<4x256xf32>
    %c0_2 = arith.constant 0 : index
    %c0_3 = arith.constant 0 : index
    %2 = vector.load %arg2[%c0_2, %c0_3] : memref<24x4xbf16, #tpu.memory_space<vmem>>, vector<24x4xbf16>
    %3 = arith.truncf %1 : vector<4x256xf32> to vector<4x256xbf16>
    %cst = arith.constant dense<0.000000e+00> : vector<24x256xf32>
    %4 = tpu.matmul %2, %3, %cst {dimension_numbers = #tpu.dot_dimension_numbers<[1], [0], [0], [1], [0, 0, 1, 1], [], []>} : vector<24x4xbf16>, vector<4x256xbf16>, vector<24x256xf32> -> vector<24x256xf32>
    %c0_4 = arith.constant 0 : index
    %c0_5 = arith.constant 0 : index
    %5 = vector.load %arg3[%c0_4, %c0_5] : memref<24x1xf32, #tpu.memory_space<vmem>>, vector<24x1xf32>
    %6 = vector.broadcast %5 : vector<24x1xf32> to vector<24x256xf32>
    %7 = arith.addf %4, %6 : vector<24x256xf32>
    %cst_6 = arith.constant 0.000000e+00 : f32
    %cst_7 = arith.constant 6.000000e+00 : f32
    %8 = vector.broadcast %cst_6 : f32 to vector<24x256xf32>
    %9 = arith.maximumf %8, %7 : vector<24x256xf32>
    %10 = vector.broadcast %cst_7 : f32 to vector<24x256xf32>
    %11 = arith.minimumf %10, %9 : vector<24x256xf32>
    %12 = tpu.iota {dimensions = array<i32: 1>} : vector<1x256xi32>
    %c16_i32 = arith.constant 16 : i32
    %c0_i32 = arith.constant 0 : i32
    %13 = arith.cmpi eq, %c16_i32, %c0_i32 : i32
    %c1_i32 = arith.constant 1 : i32
    %14 = arith.select %13, %c1_i32, %c16_i32 : i32
    %15 = vector.broadcast %14 : i32 to vector<1x256xi32>
    %16 = arith.remsi %12, %15 : vector<1x256xi32>
    %c0_i32_8 = arith.constant 0 : i32
    %17 = vector.broadcast %c0_i32_8 : i32 to vector<1x256xi32>
    %18 = arith.cmpi ne, %16, %17 : vector<1x256xi32>
    %c0_i32_9 = arith.constant 0 : i32
    %19 = vector.broadcast %c0_i32_9 : i32 to vector<1x256xi32>
    %20 = arith.cmpi slt, %16, %19 : vector<1x256xi32>
    %c0_i32_10 = arith.constant 0 : i32
    %21 = arith.cmpi slt, %14, %c0_i32_10 : i32
    %22 = vector.broadcast %21 : i1 to vector<1x256xi1>
    %23 = vector.broadcast %22 : vector<1x256xi1> to vector<1x256xi1>
    %24 = arith.xori %20, %23 : vector<1x256xi1>
    %25 = arith.andi %24, %18 : vector<1x256xi1>
    %26 = vector.broadcast %14 : i32 to vector<1x256xi32>
    %27 = arith.addi %16, %26 : vector<1x256xi32>
    %28 = arith.select %25, %27, %16 : vector<1x256xi1>, vector<1x256xi32>
    %c0_i32_11 = arith.constant 0 : i32
    %29 = vector.broadcast %c0_i32_11 : i32 to vector<1x256xi32>
    %30 = arith.cmpi ne, %28, %29 : vector<1x256xi32>
    %c15_i32 = arith.constant 15 : i32
    %31 = vector.broadcast %c15_i32 : i32 to vector<1x256xi32>
    %32 = arith.cmpi ne, %28, %31 : vector<1x256xi32>
    %c0_12 = arith.constant 0 : index
    %c0_13 = arith.constant 0 : index
    %33 = vector.load %arg4[%c0_12, %c0_13] : memref<24x9xf32, #tpu.memory_space<vmem>>, vector<24x9xf32>
    %cst_14 = arith.constant 0.000000e+00 : f32
    %34 = vector.broadcast %cst_14 : f32 to vector<24x256xf32>
    %cst_15 = arith.constant 0.000000e+00 : f32
    %35 = vector.broadcast %cst_15 : f32 to vector<24x17xf32>
    %36 = vector.extract_strided_slice %11 {offsets = [0, 0], sizes = [24, 239], strides = [1, 1]} : vector<24x256xf32> to vector<24x239xf32>
    %37 = tpu.concatenate %35, %36 in 1 : vector<24x17xf32>, vector<24x239xf32> -> vector<24x256xf32>
    %cst_16 = arith.constant 0.000000e+00 : f32
    %38 = vector.shape_cast %30 : vector<1x256xi1> to vector<1x256xi1>
    %39 = vector.broadcast %38 : vector<1x256xi1> to vector<24x256xi1>
    %40 = vector.broadcast %cst_16 : f32 to vector<24x256xf32>
    %41 = arith.select %39, %37, %40 : vector<24x256xi1>, vector<24x256xf32>
    %42 = vector.extract_strided_slice %33 {offsets = [0, 0], sizes = [24, 1], strides = [1, 1]} : vector<24x9xf32> to vector<24x1xf32>
    %43 = vector.broadcast %42 : vector<24x1xf32> to vector<24x256xf32>
    %44 = arith.mulf %41, %43 : vector<24x256xf32>
    %45 = arith.addf %34, %44 : vector<24x256xf32>
    %cst_17 = arith.constant 0.000000e+00 : f32
    %46 = vector.broadcast %cst_17 : f32 to vector<24x16xf32>
    %47 = vector.extract_strided_slice %11 {offsets = [0, 0], sizes = [24, 240], strides = [1, 1]} : vector<24x256xf32> to vector<24x240xf32>
    %48 = tpu.concatenate %46, %47 in 1 : vector<24x16xf32>, vector<24x240xf32> -> vector<24x256xf32>
    %49 = vector.extract_strided_slice %33 {offsets = [0, 1], sizes = [24, 1], strides = [1, 1]} : vector<24x9xf32> to vector<24x1xf32>
    %50 = vector.broadcast %49 : vector<24x1xf32> to vector<24x256xf32>
    %51 = arith.mulf %48, %50 : vector<24x256xf32>
    %52 = arith.addf %45, %51 : vector<24x256xf32>
    %cst_18 = arith.constant 0.000000e+00 : f32
    %53 = vector.broadcast %cst_18 : f32 to vector<24x15xf32>
    %54 = vector.extract_strided_slice %11 {offsets = [0, 0], sizes = [24, 241], strides = [1, 1]} : vector<24x256xf32> to vector<24x241xf32>
    %55 = tpu.concatenate %53, %54 in 1 : vector<24x15xf32>, vector<24x241xf32> -> vector<24x256xf32>
    %cst_19 = arith.constant 0.000000e+00 : f32
    %56 = vector.shape_cast %32 : vector<1x256xi1> to vector<1x256xi1>
    %57 = vector.broadcast %56 : vector<1x256xi1> to vector<24x256xi1>
    %58 = vector.broadcast %cst_19 : f32 to vector<24x256xf32>
    %59 = arith.select %57, %55, %58 : vector<24x256xi1>, vector<24x256xf32>
    %60 = vector.extract_strided_slice %33 {offsets = [0, 2], sizes = [24, 1], strides = [1, 1]} : vector<24x9xf32> to vector<24x1xf32>
    %61 = vector.broadcast %60 : vector<24x1xf32> to vector<24x256xf32>
    %62 = arith.mulf %59, %61 : vector<24x256xf32>
    %63 = arith.addf %52, %62 : vector<24x256xf32>
    %cst_20 = arith.constant 0.000000e+00 : f32
    %64 = vector.broadcast %cst_20 : f32 to vector<24x1xf32>
    %65 = vector.extract_strided_slice %11 {offsets = [0, 0], sizes = [24, 255], strides = [1, 1]} : vector<24x256xf32> to vector<24x255xf32>
    %66 = tpu.concatenate %64, %65 in 1 : vector<24x1xf32>, vector<24x255xf32> -> vector<24x256xf32>
    %cst_21 = arith.constant 0.000000e+00 : f32
    %67 = vector.shape_cast %30 : vector<1x256xi1> to vector<1x256xi1>
    %68 = vector.broadcast %67 : vector<1x256xi1> to vector<24x256xi1>
    %69 = vector.broadcast %cst_21 : f32 to vector<24x256xf32>
    %70 = arith.select %68, %66, %69 : vector<24x256xi1>, vector<24x256xf32>
    %71 = vector.extract_strided_slice %33 {offsets = [0, 3], sizes = [24, 1], strides = [1, 1]} : vector<24x9xf32> to vector<24x1xf32>
    %72 = vector.broadcast %71 : vector<24x1xf32> to vector<24x256xf32>
    %73 = arith.mulf %70, %72 : vector<24x256xf32>
    %74 = arith.addf %63, %73 : vector<24x256xf32>
    %75 = vector.extract_strided_slice %33 {offsets = [0, 4], sizes = [24, 1], strides = [1, 1]} : vector<24x9xf32> to vector<24x1xf32>
    %76 = vector.broadcast %75 : vector<24x1xf32> to vector<24x256xf32>
    %77 = arith.mulf %11, %76 : vector<24x256xf32>
    %78 = arith.addf %74, %77 : vector<24x256xf32>
    %79 = vector.extract_strided_slice %11 {offsets = [0, 1], sizes = [24, 255], strides = [1, 1]} : vector<24x256xf32> to vector<24x255xf32>
    %cst_22 = arith.constant 0.000000e+00 : f32
    %80 = vector.broadcast %cst_22 : f32 to vector<24x1xf32>
    %81 = tpu.concatenate %79, %80 in 1 : vector<24x255xf32>, vector<24x1xf32> -> vector<24x256xf32>
    %cst_23 = arith.constant 0.000000e+00 : f32
    %82 = vector.shape_cast %32 : vector<1x256xi1> to vector<1x256xi1>
    %83 = vector.broadcast %82 : vector<1x256xi1> to vector<24x256xi1>
    %84 = vector.broadcast %cst_23 : f32 to vector<24x256xf32>
    %85 = arith.select %83, %81, %84 : vector<24x256xi1>, vector<24x256xf32>
    %86 = vector.extract_strided_slice %33 {offsets = [0, 5], sizes = [24, 1], strides = [1, 1]} : vector<24x9xf32> to vector<24x1xf32>
    %87 = vector.broadcast %86 : vector<24x1xf32> to vector<24x256xf32>
    %88 = arith.mulf %85, %87 : vector<24x256xf32>
    %89 = arith.addf %78, %88 : vector<24x256xf32>
    %90 = vector.extract_strided_slice %11 {offsets = [0, 15], sizes = [24, 241], strides = [1, 1]} : vector<24x256xf32> to vector<24x241xf32>
    %cst_24 = arith.constant 0.000000e+00 : f32
    %91 = vector.broadcast %cst_24 : f32 to vector<24x15xf32>
    %92 = tpu.concatenate %90, %91 in 1 : vector<24x241xf32>, vector<24x15xf32> -> vector<24x256xf32>
    %cst_25 = arith.constant 0.000000e+00 : f32
    %93 = vector.shape_cast %30 : vector<1x256xi1> to vector<1x256xi1>
    %94 = vector.broadcast %93 : vector<1x256xi1> to vector<24x256xi1>
    %95 = vector.broadcast %cst_25 : f32 to vector<24x256xf32>
    %96 = arith.select %94, %92, %95 : vector<24x256xi1>, vector<24x256xf32>
    %97 = vector.extract_strided_slice %33 {offsets = [0, 6], sizes = [24, 1], strides = [1, 1]} : vector<24x9xf32> to vector<24x1xf32>
    %98 = vector.broadcast %97 : vector<24x1xf32> to vector<24x256xf32>
    %99 = arith.mulf %96, %98 : vector<24x256xf32>
    %100 = arith.addf %89, %99 : vector<24x256xf32>
    %101 = vector.extract_strided_slice %11 {offsets = [0, 16], sizes = [24, 240], strides = [1, 1]} : vector<24x256xf32> to vector<24x240xf32>
    %cst_26 = arith.constant 0.000000e+00 : f32
    %102 = vector.broadcast %cst_26 : f32 to vector<24x16xf32>
    %103 = tpu.concatenate %101, %102 in 1 : vector<24x240xf32>, vector<24x16xf32> -> vector<24x256xf32>
    %104 = vector.extract_strided_slice %33 {offsets = [0, 7], sizes = [24, 1], strides = [1, 1]} : vector<24x9xf32> to vector<24x1xf32>
    %105 = vector.broadcast %104 : vector<24x1xf32> to vector<24x256xf32>
    %106 = arith.mulf %103, %105 : vector<24x256xf32>
    %107 = arith.addf %100, %106 : vector<24x256xf32>
    %108 = vector.extract_strided_slice %11 {offsets = [0, 17], sizes = [24, 239], strides = [1, 1]} : vector<24x256xf32> to vector<24x239xf32>
    %cst_27 = arith.constant 0.000000e+00 : f32
    %109 = vector.broadcast %cst_27 : f32 to vector<24x17xf32>
    %110 = tpu.concatenate %108, %109 in 1 : vector<24x239xf32>, vector<24x17xf32> -> vector<24x256xf32>
    %cst_28 = arith.constant 0.000000e+00 : f32
    %111 = vector.shape_cast %32 : vector<1x256xi1> to vector<1x256xi1>
    %112 = vector.broadcast %111 : vector<1x256xi1> to vector<24x256xi1>
    %113 = vector.broadcast %cst_28 : f32 to vector<24x256xf32>
    %114 = arith.select %112, %110, %113 : vector<24x256xi1>, vector<24x256xf32>
    %115 = vector.extract_strided_slice %33 {offsets = [0, 8], sizes = [24, 1], strides = [1, 1]} : vector<24x9xf32> to vector<24x1xf32>
    %116 = vector.broadcast %115 : vector<24x1xf32> to vector<24x256xf32>
    %117 = arith.mulf %114, %116 : vector<24x256xf32>
    %118 = arith.addf %107, %117 : vector<24x256xf32>
    %c0_29 = arith.constant 0 : index
    %c0_30 = arith.constant 0 : index
    %119 = vector.load %arg5[%c0_29, %c0_30] : memref<24x1xf32, #tpu.memory_space<vmem>>, vector<24x1xf32>
    %120 = vector.broadcast %119 : vector<24x1xf32> to vector<24x256xf32>
    %121 = arith.addf %118, %120 : vector<24x256xf32>
    %cst_31 = arith.constant 0.000000e+00 : f32
    %cst_32 = arith.constant 6.000000e+00 : f32
    %122 = vector.broadcast %cst_31 : f32 to vector<24x256xf32>
    %123 = arith.maximumf %122, %121 : vector<24x256xf32>
    %124 = vector.broadcast %cst_32 : f32 to vector<24x256xf32>
    %125 = arith.minimumf %124, %123 : vector<24x256xf32>
    %126 = arith.truncf %125 : vector<24x256xf32> to vector<24x256xbf16>
    %c0_33 = arith.constant 0 : index
    %c0_34 = arith.constant 0 : index
    %127 = vector.load %arg6[%c0_33, %c0_34] : memref<4x24xbf16, #tpu.memory_space<vmem>>, vector<4x24xbf16>
    %cst_35 = arith.constant dense<0.000000e+00> : vector<4x256xf32>
    %128 = tpu.matmul %127, %126, %cst_35 {dimension_numbers = #tpu.dot_dimension_numbers<[1], [0], [0], [1], [0, 0, 1, 1], [], []>} : vector<4x24xbf16>, vector<24x256xbf16>, vector<4x256xf32> -> vector<4x256xf32>
    %c0_36 = arith.constant 0 : index
    %c0_37 = arith.constant 0 : index
    %129 = vector.load %arg7[%c0_36, %c0_37] : memref<4x1xf32, #tpu.memory_space<vmem>>, vector<4x1xf32>
    %130 = vector.broadcast %129 : vector<4x1xf32> to vector<4x256xf32>
    %131 = arith.addf %128, %130 : vector<4x256xf32>
    %132 = arith.addf %131, %1 : vector<4x256xf32>
    %c0_38 = arith.constant 0 : index
    %c0_39 = arith.constant 0 : index
    %c0_40 = arith.constant 0 : index
    %133 = vector.load %arg8[%c0_38, %c0_39, %c0_40] : memref<1x4x256xf32, #tpu.memory_space<vmem>>, vector<1x4x256xf32>
    %134 = vector.shape_cast %133 : vector<1x4x256xf32> to vector<4x256xf32>
    %135 = vector.shape_cast %132 : vector<4x256xf32> to vector<1x4x256xf32>
    tpu.vector_store %arg8[%c0_38, %c0_39, %c0_40], %135 {strides = array<i32>} : memref<1x4x256xf32, #tpu.memory_space<vmem>>, vector<1x4x256xf32>,
    return
  }
  func.func @transform_0(%arg0: i32) -> (i32, i32, i32) {
    %c0_i32 = arith.constant 0 : i32
    %c0_i32_0 = arith.constant 0 : i32
    %c0_i32_1 = arith.constant 0 : i32
    return %arg0, %c0_i32, %c0_i32_0 : i32, i32, i32
  }
  func.func @transform_1(%arg0: i32) -> (i32, i32) {
    %c0_i32 = arith.constant 0 : i32
    %c0_i32_0 = arith.constant 0 : i32
    %c0_i32_1 = arith.constant 0 : i32
    return %c0_i32, %c0_i32_0 : i32, i32
  }
  func.func @transform_2(%arg0: i32) -> (i32, i32) {
    %c0_i32 = arith.constant 0 : i32
    %c0_i32_0 = arith.constant 0 : i32
    %c0_i32_1 = arith.constant 0 : i32
    return %c0_i32, %c0_i32_0 : i32, i32
  }
  func.func @transform_3(%arg0: i32) -> (i32, i32) {
    %c0_i32 = arith.constant 0 : i32
    %c0_i32_0 = arith.constant 0 : i32
    %c0_i32_1 = arith.constant 0 : i32
    return %c0_i32, %c0_i32_0 : i32, i32
  }
  func.func @transform_4(%arg0: i32) -> (i32, i32) {
    %c0_i32 = arith.constant 0 : i32
    %c0_i32_0 = arith.constant 0 : i32
    %c0_i32_1 = arith.constant 0 : i32
    return %c0_i32, %c0_i32_0 : i32, i32
  }
  func.func @transform_5(%arg0: i32) -> (i32, i32) {
    %c0_i32 = arith.constant 0 : i32
    %c0_i32_0 = arith.constant 0 : i32
    %c0_i32_1 = arith.constant 0 : i32
    return %c0_i32, %c0_i32_0 : i32, i32
  }
  func.func @transform_6(%arg0: i32) -> (i32, i32) {
    %c0_i32 = arith.constant 0 : i32
    %c0_i32_0 = arith.constant 0 : i32
    %c0_i32_1 = arith.constant 0 : i32
    return %c0_i32, %c0_i32_0 : i32, i32
  }
  func.func @transform_7(%arg0: i32) -> (i32, i32, i32) {
    %c0_i32 = arith.constant 0 : i32
    %c0_i32_0 = arith.constant 0 : i32
    %c0_i32_1 = arith.constant 0 : i32
    return %arg0, %c0_i32, %c0_i32_0 : i32, i32, i32
  }
}

</mosaic_0001>

<bundles_post_ra>
// kernel: tpu_custom_call.1
= control target key start
LH: loop header
LB: loop body
LE: loop exit
PB: predicated region body
PF: predicated region fallthrough
CT: control target
= control target key end

     0   :  { %12 = vsyncpa [#allocation3], 0  ;;  %s1845_s0 = inlined_call_operand.vmem [shape: f32[2,4,256], index: 0, kind: input, shape index: {}]   ;;  %s1846_s1 = inlined_call_operand.vmem [shape: bf16[24,4], index: 1, kind: input, shape index: {}]   ;;  %s1847_s2 = inlined_call_operand.vmem [shape: f32[24,1], index: 2, kind: input, shape index: {}]   ;;  %s1848_s3 = inlined_call_operand.vmem [shape: f32[24,9], index: 3, kind: input, shape index: {}]   ;;  %s1849_s4 = inlined_call_operand.vmem [shape: f32[24,1], index: 4, kind: input, shape index: {}]   ;;  %s1850_s5 = inlined_call_operand.vmem [shape: bf16[4,24], index: 5, kind: input, shape index: {}]   ;;  %s1851_s6 = inlined_call_operand.vmem [shape: f32[4,1], index: 6, kind: input, shape index: {}]   ;;  %s1852_s7 = inlined_call_operand.hbm [shape: f32[2,4,256], index: 7, kind: output, shape index: {}]  }
   0x1   :  { %14 = vsyncpa [#allocation3 + $0x1], 0  ;;  %s1295_s24 = smov 0   ;;  %s1297_s25 = smov 0  }
   0x2   :  { %s1299_s26 = smov 0   ;;  %s1301_s27 = smov 0  }
   0x3 LB: > { %s1316_s28 = sadd.s32 4294967295, %s1235_s27   ;;  %s1073_s29 = sadd.s32 4294967294, %s1235_s27   ;;  %s1235_s27 = sphi %s1301_s27, %s1890_s27   ;;  %s1231_s26 = sphi %s1299_s26, %s1889_s26   ;;  %s1227_s25 = sphi %s1297_s25, %s1888_s25   ;;  %s1223_s24 = sphi %s1295_s24, %s1887_s24  }
   0x4   : > { %s1320_s30 = sadd.s32 1, %s1235_s27   ;;  %s179_s8 = sadd.s32 1, %s1231_s26 }
   0x5   : > { %s176_s9 = ssub.s32 %s1235_s27, %s1320_s30  ;;  %p189_p0 = scmp.ne.s32.totalorder %s1231_s26, %s1227_s25 }
   0x6   : > { %p177_p1 = scmp.eq.s32.totalorder %s176_s9, 0  ;;  %p190_p2 = scmp.eq.s32.totalorder %s1316_s28, 1 }
   0x7   : > { %p195_p3 = scmp.ne.s32.totalorder %s1227_s25, %s1223_s24  ;;  %p196_p4 = scmp.eq.s32.totalorder %s1073_s29, 1 }
   0x8   : > { %s1331_s10 = scalar_select %p177_p1, %s1231_s26, %s179_s8  }
   0x9   : > { %p1333_p5 = por %p190_p2, %p189_p0  ;;  %p1337_p6 = por %p196_p4, %p195_p3 }
   0xa   : > { %p1076_p7 = scmp.ge.s32.totalorder %s1235_s27, 1  ;;  %p240_p8 = scmp.lt.s32.totalorder %s1235_s27, 3 }
   0xc   : > { %p241_p9 = pnand %p1076_p7, %p240_p8 }
   0xe   : > { %244 = sbr.rel (%p241_p9) target bundleno = 724 (0x2d4), region = 48 }
  0x15   : > { %p272_p10 = scmp.lt.s32.totalorder %s1316_s28, 1  ;;  %v1237_v0 = vmov 0   ;;  %v1238_v1 = vmov 1   ;;  %v1350_v2 = vld [vmem:[%s1848_s3 + $0x8] sm:$0xff]  ;;  %v289_v3 = vld [vmem:[%s1847_s2 + $0x10] sm:$0xff]  ;;  %v1366_v5 = vld [vmem:[%s1848_s3] sm:$0xff] }
  0x16   : > { %359 = vmatprep.mubr.bf16.mxu0 %v1237_v0  ;;  %1150 = vset.pattern.permute.xlu1 %v1237_v0  ;;  %v423_v4 = vld [vmem:[%s1848_s3 + $0x10] sm:$0xff]  ;;  %vm320_vm0 = vcmask 1041408   ;;  %v1239_v9 = vmov 2   ;;  %v1171_v12 = vld [vmem:[%s1846_s1] sm:$0xff]   ;;  %vm313_vm1 = vcmask 31744   ;;  %v1240_v13 = vmov 3  }
  0x17   : > { %s273_s13 = scalar_select %p272_p10, %s1316_s28, 1  ;;  %1152 = vset.pattern.permute.xlu0 %v1238_v1  ;;  %983 = vmatprep.mubr.bf16.mxu1 %v1237_v0  ;;  %v1172_v14 = vld [vmem:[%s1846_s1 + $0x8] ss:$0 sps:$4 sm:$0xff]   ;;  %v1241_v15 = vmov 4   ;;  %v1242_v16 = vmov 5   ;;  %v1243_v17 = vmov 6  }
  0x18   : > { %522 = vperm.xlu0 %1152, %v1350_v2   ;;  %302 = vperm.xlu1 %1150, %v289_v3   ;;  %v1244_v18 = vmov 7   ;;  %v1245_v19 = vmov 8   ;;  %v287_v20 = vld [vmem:[%s1847_s2] sm:$0xff]  ;;  %v288_v21 = vld [vmem:[%s1847_s2 + $0x8] sm:$0xff]  ;;  %s1246_s29 = smov 16   ;;  %s1247_s8 = smov 17  }
  0x19   : > { %s1092_s18 = sshll.u32 %s273_s13, 3  ;;  %v893_v22 = vld [vmem:[%s1849_s4] sm:$0xff]  ;;  %v894_v23 = vld [vmem:[%s1849_s4 + $0x8] sm:$0xff]  ;;  %s1248_s9 = smov 15   ;;  %vm442_vm2 = vcmask 138240   ;;  %vm553_vm3 = vcmask 121856  }
  0x1a   : > { %s276_s21 = scalar_lea.vmem %s1845_s0, %s1092_s18  ;;  %s1249_s13 = smov 1   ;;  %vm504_vm4 = vcmask 130048   ;;  %vm612_vm6 = vcmask 7168   ;;  %vm691_vm10 = vcmask 1039360   ;;  %vm746_vm11 = vcmask 924672  }
  0x1b   : > { %v1368_v6 = vld [vmem:[%s276_s21] sm:$0xff]  ;;  %s1250_s14 = smov 127   ;;  %s1251_s15 = smov 113   ;;  %vm801_vm12 = vcmask 916480   ;;  %vm850_vm13 = vcmask 908288   ;;  %vm944_vm14 = vcmask 1043456  }
  0x1c   : > { %1863 = vst [vmem:[#allocation5_spill] sm:$0xff] %v1368_v6  ;;  %v1372_v7 = vcombine.high %v1368_v6, %v1368_v6  ;;  %v285_v8 = vpack.c.bf16 %v1368_v6, %v1368_v6  ;;  %1156 = vset.pattern.permute.xlu0 %v1239_v9  ;;  %467 = vperm.xlu1 %1150, %v1366_v5   ;;  %s1252_s16 = smov 112   ;;  %s1253_s17 = smov 111   ;;  %vm940_vm15 = vcmask 195584  }
  0x1d   : > { %585 = vperm.xlu0 %1156, %v423_v4  }
  0x1e   : > { %1864 = vst [vmem:[#allocation6_spill] sm:$0xff] %v1372_v7  ;;  %v286_v10 = vpack.c.bf16 %v1372_v7, %v1372_v7  ;;  %v322_v11 = vsel %vm320_vm0, %v285_v8, 0 }
  0x20   : > { %1082 = vmatprep.subr.msk.bf16.mxu0 %vm320_vm0, %v286_v10  ;;  %1151 = vset.pattern.permute.xlu1 %v1238_v1 }
  0x21   : > { %328 = vmatpush1.bf16.msra.mxu0 %v322_v11  ;;  %1157 = vset.pattern.permute.xlu0 %v1240_v13 }
  0x22   : > { %636 = vperm.xlu0 %1157, %v1350_v2   ;;  %518 = vperm.xlu1 %1151, %v1366_v5  }
  0x24   : > { %1083 = vmatmul.mubr.msk.bf16.vlgmr.msra.gmra.mrb[0].mxu0 %vm313_vm1, %v1171_v12 }
  0x25   : > { %369 = vmatprep.mubr.bf16.mxu0 %v1237_v0 }
  0x26   : > { %640 = vperm.xlu0 %1157, %v423_v4   ;;  %1153 = vset.pattern.permute.xlu1 %v1239_v9 }
  0x27   : > { %577 = vperm.xlu1 %1153, %v1366_v5  }
  0x2a   : > { %1160 = vset.pattern.permute.xlu0 %v1241_v15 }
  0x2b   : > { %664 = vperm.xlu0 %1160, %v423_v4   ;;  %581 = vperm.xlu1 %1153, %v1350_v2  }
  0x2c   : > { %1084 = vmatmul.mubr.msk.bf16.gmra.mrb[4].mxu0 %vm313_vm1, %v1172_v14 }
  0x2f   : > { %1162 = vset.pattern.permute.xlu0 %v1242_v16  ;;  %1154 = vset.pattern.permute.xlu1 %v1238_v1 }
  0x30   : > { %719 = vperm.xlu0 %1162, %v423_v4   ;;  %526 = vperm.xlu1 %1154, %v423_v4  }
  0x34   : > { %1164 = vset.pattern.permute.xlu0 %v1243_v17  ;;  %1155 = vset.pattern.permute.xlu1 %v1240_v13 }
  0x35   : > { %774 = vperm.xlu0 %1164, %v423_v4   ;;  %632 = vperm.xlu1 %1155, %v1366_v5  }
  0x39   : > { %1166 = vset.pattern.permute.xlu0 %v1244_v18  ;;  %1158 = vset.pattern.permute.xlu1 %v1241_v15  ;;  %v895_v15 = vld [vmem:[%s1849_s4 + $0x10] sm:$0xff] }
  0x3a   : > { %823 = vperm.xlu0 %1166, %v423_v4   ;;  %656 = vperm.xlu1 %1158, %v1366_v5  }
  0x3e   : > { %1167 = vset.pattern.permute.xlu0 %v1245_v19  ;;  %660 = vperm.xlu1 %1158, %v1350_v2  }
  0x3f   : > { %878 = vperm.xlu0 %1167, %v423_v4  }
  0x42   : > { %1159 = vset.pattern.permute.xlu1 %v1242_v16  ;;  %v934_v16 = vld [vmem:[%s1851_s6] sm:$0xf] }
  0x43   : > { %1168 = vset.pattern.permute.xlu0 %v1237_v0  ;;  %711 = vperm.xlu1 %1159, %v1366_v5  }
  0x44   : > { %292 = vperm.xlu0 %1168, %v287_v20  }
  0x47   : > { %715 = vperm.xlu1 %1159, %v1350_v2  }
  0x48   : > { %297 = vperm.xlu0 %1168, %v288_v21  }
  0x4b   : > { %1161 = vset.pattern.permute.xlu1 %v1243_v17 }
  0x4c   : > { %472 = vperm.xlu0 %1168, %v1350_v2   ;;  %766 = vperm.xlu1 %1161, %v1366_v5  }
  0x50   : > { %477 = vperm.xlu0 %1168, %v423_v4   ;;  %770 = vperm.xlu1 %1161, %v1350_v2  }
  0x54   : > { %1163 = vset.pattern.permute.xlu1 %v1244_v18 }
  0x55   : > { %815 = vperm.xlu1 %1163, %v1366_v5  }
  0x59   : > { %819 = vperm.xlu1 %1163, %v1350_v2  }
  0x5d   : > { %1165 = vset.pattern.permute.xlu1 %v1245_v19 }
  0x5e   : > { %870 = vperm.xlu1 %1165, %v1366_v5  }
  0x62   : > { %874 = vperm.xlu1 %1165, %v1350_v2  }
  0x66   : > { %1169 = vset.pattern.permute.xlu1 %v1237_v0 }
  0x67   : > { %898 = vperm.xlu1 %1169, %v893_v22  }
  0x6b   : > { %903 = vperm.xlu1 %1169, %v894_v23  }
  0x97   : > { %v1416_v24 = vpop.permute.xlu0 %522  ;;  %v1422_v27 = vpop.permute.xlu1 %302 }
  0x9b   : > { %v1426_v29 = vpop.permute.xlu1 %467 }
  0x9c   : > { %v1418_v25 = vpop.permute.xlu0 %585 }
  0xa1   : > { %v1420_v26 = vpop.permute.xlu0 %636  ;;  %v1430_v31 = vpop.permute.xlu1 %518 }
  0xa5   : > { %v1424_v28 = vpop.permute.xlu0 %640 }
  0xa6   : > { %v1434_v33 = vpop.permute.xlu1 %577 }
  0xaa   : > { %v1428_v30 = vpop.permute.xlu0 %664  ;;  %v1438_v35 = vpop.permute.xlu1 %581 }
  0xab   : > { %1865 = vst [vmem:[#allocation7_spill] sm:$0xff] %v1428_v30 }
  0xaf   : > { %v1432_v32 = vpop.permute.xlu0 %719  ;;  %v1442_v37 = vpop.permute.xlu1 %526 }
  0xb0   : > { %1866 = vst [vmem:[#allocation8_spill] sm:$0xff] %v1432_v32 }
  0xb4   : > { %v1436_v34 = vpop.permute.xlu0 %774  ;;  %v1446_v39 = vpop.permute.xlu1 %632 }
  0xb5   : > { %1867 = vst [vmem:[#allocation9_spill] sm:$0xff] %v1436_v34 }
  0xb9   : > { %v1440_v36 = vpop.permute.xlu0 %823  ;;  %v1448_v42 = vpop.permute.xlu1 %656 }
  0xba   : > { %1868 = vst [vmem:[#allocation10_spill] sm:$0xff] %v1440_v36 }
  0xbd   : > { %v661_v56 = vpop.permute.xlu1 %660 }
  0xbe   : > { %v1444_v38 = vpop.permute.xlu0 %878 }
  0xbf   : > { %1869 = vst [vmem:[#allocation11_spill] sm:$0xff] %v1444_v38 }
  0xc2   : > { %v1505_v4 = vpop.permute.xlu1 %711 }
  0xc3   : > { %v293_v40 = vpop.permute.xlu0 %292 }
  0xc6   : > { %v1512_v8 = vpop.permute.xlu1 %715 }
  0xc7   : > { %v298_v45 = vpop.permute.xlu0 %297 }
  0xcb   : > { %v1522_v10 = vpop.permute.xlu1 %766  ;;  %v1564_v20 = vpop.permute.xlu0 %472 }
  0xcf   : > { %v1530_v13 = vpop.permute.xlu1 %770  ;;  %v1570_v22 = vpop.permute.xlu0 %477 }
  0xd4   : > { %v1540_v14 = vpop.permute.xlu1 %815 }
  0xd8   : > { %v1550_v17 = vpop.permute.xlu1 %819 }
  0xdd   : > { %v1556_v18 = vpop.permute.xlu1 %870 }
  0xe1   : > { %v1560_v19 = vpop.permute.xlu1 %874 }
  0xe6   : > { %v1566_v21 = vpop.permute.xlu1 %898 }
  0xea   : > { %v1572_v23 = vpop.permute.xlu1 %903 }
  0xf7   : > { %v361_v41 = vpop.f32.mrb[0].mxu0 }
  0xf8   : > { %v362_v43 = vadd.f32 %v361_v41, %v293_v40  ;;  %v363_v44 = vpop.f32.mrb[1].mxu0 }
  0xf9   : > { %v364_v46 = vadd.f32 %v363_v44, %v293_v40  ;;  %v365_v47 = vpop.f32.mrb[2].mxu0 }
  0xfa   : > { %v378_v48 = vmax.f32 %v362_v43, 0.0  ;;  %v366_v49 = vadd.f32 %v365_v47, %v298_v45  ;;  %v367_v50 = vpop.f32.mrb[3].mxu0 }
  0xfb   : > { %v368_v51 = vadd.f32 %v367_v50, %v298_v45  ;;  %v379_v53 = vmax.f32 %v364_v46, 0.0 }
  0xfc   : > { %v1450_v52 = vmin.f32 %v378_v48, 6.0  ;;  %v380_v54 = vmax.f32 %v366_v49, 0.0  ;;  %v390_v48 = vlaneseq }
  0xfd   : > { %v381_v55 = vmax.f32 %v368_v51, 0.0  ;;  %v1456_v60 = vmin.f32 %v379_v53, 6.0 }
  0xfe   : > { %v386_v57 = vmin.f32 %v380_v54, 6.0  ;;  %492 = vrot.lane.b32.xlu0 %v1450_v52, %s1246_s29  ;;  %430 = vrot.lane.b32.xlu1 %v1450_v52, %s1247_s8  ;;  %v391_v51 = vand.u32 127, %v390_v48 }
  0xff   : > { %v387_v58 = vmin.f32 %v381_v55, 6.0  ;;  %v371_v59 = vpop.f32.mrb[4].mxu0 }
 0x100   : > { %v1458_v61 = vmul.f32 %v661_v56, %v386_v57  ;;  %v373_v62 = vpop.f32.mrb[5].mxu0  ;;  %v372_v2 = vadd.f32 %v371_v59, %v1422_v27  ;;  %v392_v55 = vadd.s32 128, %v391_v51 }
 0x101   : > { %v1460_v63 = vmul.f32 %v661_v56, %v387_v58  ;;  %v375_v0 = vpop.f32.mrb[6].mxu0  ;;  %v374_v9 = vadd.f32 %v373_v62, %v1422_v27  ;;  %v397_v56 = vand.u32 15, %v391_v51  ;;  %v1883_v62 = vld [vmem:[#allocation10_spill] sm:$0xff] }
 0x102   : > { %541 = vrot.lane.b32.xlu0 %v1450_v52, %s1248_s9  ;;  %432 = vrot.lane.b32.xlu1 %v1456_v60, %s1247_s8  ;;  %v376_v1 = vpop.f32.mrb[7].mxu0  ;;  %v382_v3 = vmax.f32 %v372_v2, 0.0  ;;  %v404_v59 = vand.u32 15, %v392_v55 }
 0x103   : > { %v383_v11 = vmax.f32 %v374_v9, 0.0  ;;  %vm1582_vm5 = vcmp.ne.s32.totalorder %v397_v56, 0  ;;  %vm1589_vm7 = vcmp.ne.s32.totalorder %v397_v56, 15 }
 0x104   : > { %v1507_v5 = vmin.f32 %v382_v3, 6.0  ;;  %vm1594_vm8 = vcmp.ne.s32.totalorder %v404_v59, 0  ;;  %vm1598_vm9 = vcmp.ne.s32.totalorder %v404_v59, 15 }
 0x105   : > { %v1528_v12 = vmin.f32 %v383_v11, 6.0 }
 0x106   : > { %600 = vrot.lane.b32.xlu0 %v1450_v52, %s1249_s13  ;;  %494 = vrot.lane.b32.xlu1 %v1456_v60, %s1246_s29  ;;  %1870 = vst [vmem:[#allocation12_spill] sm:$0xff] %v1507_v5 }
 0x10a   : > { %679 = vrot.lane.b32.xlu0 %v1450_v52, %s1250_s14  ;;  %543 = vrot.lane.b32.xlu1 %v1456_v60, %s1248_s9 }
 0x10e   : > { %734 = vrot.lane.b32.xlu0 %v1450_v52, %s1251_s15  ;;  %602 = vrot.lane.b32.xlu1 %v1456_v60, %s1249_s13 }
 0x112   : > { %789 = vrot.lane.b32.xlu0 %v1450_v52, %s1252_s16  ;;  %683 = vrot.lane.b32.xlu1 %v386_v57, %s1250_s14 }
 0x116   : > { %838 = vrot.lane.b32.xlu0 %v1450_v52, %s1253_s17  ;;  %738 = vrot.lane.b32.xlu1 %v386_v57, %s1251_s15 }
 0x11a   : > { %681 = vrot.lane.b32.xlu0 %v1456_v60, %s1250_s14  ;;  %793 = vrot.lane.b32.xlu1 %v386_v57, %s1252_s16 }
 0x11e   : > { %736 = vrot.lane.b32.xlu0 %v1456_v60, %s1251_s15  ;;  %842 = vrot.lane.b32.xlu1 %v386_v57, %s1253_s17 }
 0x122   : > { %791 = vrot.lane.b32.xlu0 %v1456_v60, %s1252_s16  ;;  %436 = vrot.lane.b32.xlu1 %v387_v58, %s1247_s8 }
 0x126   : > { %840 = vrot.lane.b32.xlu0 %v1456_v60, %s1253_s17  ;;  %498 = vrot.lane.b32.xlu1 %v387_v58, %s1246_s29 }
 0x12a   : > { %434 = vrot.lane.b32.xlu0 %v386_v57, %s1247_s8  ;;  %547 = vrot.lane.b32.xlu1 %v387_v58, %s1248_s9 }
 0x12e   : > { %496 = vrot.lane.b32.xlu0 %v386_v57, %s1246_s29  ;;  %606 = vrot.lane.b32.xlu1 %v387_v58, %s1249_s13 }
 0x132   : > { %545 = vrot.lane.b32.xlu0 %v386_v57, %s1248_s9  ;;  %685 = vrot.lane.b32.xlu1 %v387_v58, %s1250_s14 }
 0x136   : > { %604 = vrot.lane.b32.xlu0 %v386_v57, %s1249_s13  ;;  %740 = vrot.lane.b32.xlu1 %v387_v58, %s1251_s15 }
 0x13a   : > { %438 = vrot.lane.b32.xlu0 %v1507_v5, %s1247_s8  ;;  %795 = vrot.lane.b32.xlu1 %v387_v58, %s1252_s16 }
 0x13e   : > { %500 = vrot.lane.b32.xlu0 %v1507_v5, %s1246_s29  ;;  %844 = vrot.lane.b32.xlu1 %v387_v58, %s1253_s17 }
 0x142   : > { %549 = vrot.lane.b32.xlu0 %v1507_v5, %s1248_s9  ;;  %687 = vrot.lane.b32.xlu1 %v1507_v5, %s1250_s14 }
 0x146   : > { %608 = vrot.lane.b32.xlu0 %v1507_v5, %s1249_s13  ;;  %846 = vrot.lane.b32.xlu1 %v1507_v5, %s1253_s17 }
 0x14a   : > { %742 = vrot.lane.b32.xlu0 %v1507_v5, %s1251_s15  ;;  %440 = vrot.lane.b32.xlu1 %v1528_v12, %s1247_s8 }
 0x14e   : > { %797 = vrot.lane.b32.xlu0 %v1507_v5, %s1252_s16  ;;  %502 = vrot.lane.b32.xlu1 %v1528_v12, %s1246_s29  ;;  %s269_s29 = sand.u32 1, %s1227_s25  }
 0x14f   : > { %s1077_s8 = sshll.u32 %s269_s29, 3  ;;  %s1000_s18 = scalar_lea.sflag [#allocation3], %s269_s29 }
 0x152   : > { %908 = vperm.xlu0 %1168, %v895_v15   ;;  %551 = vrot.lane.b32.xlu1 %v1528_v12, %s1248_s9  ;;  %s1093_s9 = sshll.u32 %s1316_s28, 7  ;;  %s1254_s28 = smov [#allocation2]  }
 0x153   : > { %s1177_s20 = sshll.u32 %s1254_s28, 4  ;;  %s1178_s20 = int_to_ptr.vmem [resolvable:$false] %s1177_s20 }
 0x154   : > { %s1179_s21 = scalar_lea.vmem %s1178_s20, 256 }
 0x156   : > { %937 = vperm.xlu0 %1168, %v934_v16   ;;  %610 = vrot.lane.b32.xlu1 %v1528_v12, %s1249_s13  ;;  %s271_s13 = scalar_lea.vmem [#allocation2], %s1077_s8 }
 0x15a   : > { %689 = vrot.lane.b32.xlu1 %v1528_v12, %s1250_s14  ;;  %s1014_s14 = sshll.u32 %s271_s13, 4  ;;  %s1805_s14 = int_to_ptr.vmem [resolvable:$true] %s1014_s14 }
 0x15b   : > { %s1173_s19 = scalar_lea.vmem %s1805_s14, 128  ;;  %p1180_p0 = scmp.lt.s32.totalorder %s1805_s14, %s1178_s20 }
 0x15c   : > { %p1174_p11 = scmp.ne.s32.totalorder %s1805_s14, %s1173_s19  ;;  %p1181_p1 = scmp.lt.s32.totalorder %s1179_s21, %s1173_s19 }
 0x15e   : > { %744 = vrot.lane.b32.xlu1 %v1528_v12, %s1251_s15  ;;  %p1175_p12 = pnand %p1174_p11, %p1333_p5  ;;  %p1182_p2 = por %p1181_p1, %p1180_p0 }
 0x160   : > { %p1176_p13 = pneg %p1175_p12 }
 0x162   : > { %799 = vrot.lane.b32.xlu1 %v1528_v12, %s1252_s16  ;;  %p1183_p3 = pnand %p1182_p2, %p1176_p13 }
 0x166   : > { %848 = vrot.lane.b32.xlu1 %v1528_v12, %s1253_s17  ;;  %s1803_s17 = scalar_lea.hbm %s1852_s7, %s1093_s9 }
 0x170   : > { %v493_v27 = vpop.permute.xlu0 %492  ;;  %v431_v40 = vpop.permute.xlu1 %430 }
 0x171   : > { %v452_v0 = vsel %vm442_vm2, 0.0, %v431_v40  ;;  %v514_v16 = vsel %vm504_vm4, 0.0, %v493_v27 }
 0x172   : > { %v459_v48 = vsel %vm1582_vm5, %v452_v0, 0.0  ;;  %v529_v34 = vmul.f32 %v1430_v31, %v514_v16 }
 0x173   : > { %v480_v0 = vmul.f32 %v1426_v29, %v459_v48 }
 0x174   : > { %v542_v41 = vpop.permute.xlu0 %541  ;;  %v433_v43 = vpop.permute.xlu1 %432 }
 0x175   : > { %v563_v9 = vsel %vm553_vm3, 0.0, %v542_v41  ;;  %v443_v51 = vsel %vm442_vm2, %v431_v40, %v433_v43  ;;  %v535_v48 = vadd.f32 %v529_v34, %v480_v0 }
 0x176   : > { %v570_v59 = vsel %vm1589_vm7, %v563_v9, 0.0  ;;  %v460_v40 = vsel %vm1594_vm8, %v443_v51, 0.0 }
 0x177   : > { %v481_v9 = vmul.f32 %v1426_v29, %v460_v40 }
 0x178   : > { %v601_v44 = vpop.permute.xlu0 %600  ;;  %v495_v45 = vpop.permute.xlu1 %494 }
 0x179   : > { %v622_v56 = vsel %vm612_vm6, 0.0, %v601_v44  ;;  %v505_v7 = vsel %vm504_vm4, %v493_v27, %v495_v45  ;;  %v588_v45 = vmul.f32 %v1434_v33, %v570_v59 }
 0x17a   : > { %v625_v27 = vsel %vm1582_vm5, %v622_v56, 0.0  ;;  %v530_v43 = vmul.f32 %v1430_v31, %v505_v7 }
 0x17b   : > { %v643_v51 = vmul.f32 %v1446_v39, %v625_v27  ;;  %v594_v59 = vadd.f32 %v588_v45, %v535_v48 }
 0x17c   : > { %v680_v46 = vpop.permute.xlu0 %679  ;;  %v544_v47 = vpop.permute.xlu1 %543 }
 0x17d   : > { %v554_v55 = vsel %vm553_vm3, %v542_v41, %v544_v47 }
 0x17e   : > { %v571_v41 = vsel %vm1598_vm9, %v554_v55, 0.0  ;;  %v536_v55 = vadd.f32 %v530_v43, %v481_v9 }
 0x17f   : > { %v589_v16 = vmul.f32 %v1434_v33, %v571_v41  ;;  %v649_v33 = vadd.f32 %v643_v51, %v594_v59 }
 0x180   : > { %v735_v49 = vpop.permute.xlu0 %734  ;;  %v603_v50 = vpop.permute.xlu1 %602 }
 0x181   : > { %v613_v36 = vsel %vm612_vm6, %v601_v44, %v603_v50  ;;  %v595_v5 = vadd.f32 %v589_v16, %v536_v55 }
 0x182   : > { %v626_v44 = vsel %vm1594_vm8, %v613_v36, 0.0 }
 0x183   : > { %v644_v56 = vmul.f32 %v1446_v39, %v626_v44 }
 0x184   : > { %v1574_v53 = vpop.permute.xlu0 %789  ;;  %v1576_v54 = vpop.permute.xlu1 %683 }
 0x185   : > { %v650_v39 = vadd.f32 %v644_v56, %v595_v5 }
 0x188   : > { %v1578_v57 = vpop.permute.xlu0 %838  ;;  %v1580_v58 = vpop.permute.xlu1 %738 }
 0x18c   : > { %v682_v1 = vpop.permute.xlu0 %681  ;;  %v1587_v2 = vpop.permute.xlu1 %793 }
 0x18d   : > { %v692_v7 = vsel %vm691_vm10, %v680_v46, %v682_v1  ;;  %v701_v31 = vsel %vm691_vm10, %v682_v1, 0.0  ;;  %v667_v46 = vmul.f32 %v1448_v42, %v1450_v52 }
 0x18e   : > { %v704_v34 = vsel %vm1589_vm7, %v692_v7, 0.0  ;;  %v705_v0 = vsel %vm1598_vm9, %v701_v31, 0.0 }
 0x18f   : > { %v722_v27 = vmul.f32 %v1505_v4, %v704_v34  ;;  %v723_v43 = vmul.f32 %v1505_v4, %v705_v0  ;;  %v673_v45 = vadd.f32 %v667_v46, %v649_v33 }
 0x190   : > { %v737_v6 = vpop.permute.xlu0 %736  ;;  %v1609_v38 = vpop.permute.xlu1 %842 }
 0x191   : > { %v747_v30 = vsel %vm746_vm11, %v735_v49, %v737_v6  ;;  %v756_v29 = vsel %vm746_vm11, %v737_v6, 0.0  ;;  %v668_v6 = vmul.f32 %v1448_v42, %v1456_v60  ;;  %v728_v51 = vadd.f32 %v722_v27, %v673_v45 }
 0x192   : > { %v759_v1 = vsel %vm1582_vm5, %v747_v30, 0.0  ;;  %v760_v40 = vsel %vm1594_vm8, %v756_v29, 0.0 }
 0x193   : > { %v674_v5 = vadd.f32 %v668_v6, %v650_v39  ;;  %v777_v44 = vmul.f32 %v1522_v10, %v759_v1  ;;  %v778_v52 = vmul.f32 %v1522_v10, %v760_v40 }
 0x194   : > { %v792_v47 = vpop.permute.xlu0 %791  ;;  %v437_v50 = vpop.permute.xlu1 %436 }
 0x195   : > { %v729_v42 = vadd.f32 %v723_v43, %v674_v5  ;;  %v783_v56 = vadd.f32 %v777_v44, %v728_v51  ;;  %v802_v10 = vsel %vm801_vm12, %v1574_v53, %v792_v47 }
 0x196   : > { %v826_v40 = vmul.f32 %v1540_v14, %v802_v10 }
 0x197   : > { %v784_v7 = vadd.f32 %v778_v52, %v729_v42 }
 0x198   : > { %v841_v36 = vpop.permute.xlu0 %840  ;;  %v499_v32 = vpop.permute.xlu1 %498 }
 0x199   : > { %v851_v59 = vsel %vm850_vm13, %v1578_v57, %v841_v36  ;;  %v860_v0 = vsel %vm850_vm13, %v841_v36, 0.0 }
 0x19a   : > { %v864_v6 = vsel %vm1598_vm9, %v860_v0, 0.0 }
 0x19c   : > { %v435_v49 = vpop.permute.xlu0 %434  ;;  %v548_v41 = vpop.permute.xlu1 %547 }
 0x19d   : > { %v453_v30 = vsel %vm442_vm2, 0.0, %v435_v49  ;;  %v444_v9 = vsel %vm442_vm2, %v435_v49, %v437_v50  ;;  %v811_v50 = vsel %vm801_vm12, %v792_v47, 0.0 }
 0x19e   : > { %v461_v55 = vsel %vm1582_vm5, %v453_v30, 0.0  ;;  %v462_v31 = vsel %vm1594_vm8, %v444_v9, 0.0  ;;  %v827_v36 = vmul.f32 %v1540_v14, %v811_v50 }
 0x19f   : > { %v482_v39 = vmul.f32 %v1564_v20, %v461_v55  ;;  %v483_v1 = vmul.f32 %v1564_v20, %v462_v31  ;;  %v863_v20 = vsel %vm1589_vm7, %v851_v59, 0.0  ;;  %v882_v55 = vmul.f32 %v1556_v18, %v864_v6 }
 0x1a0   : > { %v497_v16 = vpop.permute.xlu0 %496  ;;  %v607_v48 = vpop.permute.xlu1 %606 }
 0x1a1   : > { %v506_v60 = vsel %vm504_vm4, %v497_v16, %v499_v32  ;;  %v515_v4 = vsel %vm504_vm4, 0.0, %v497_v16 }
 0x1a2   : > { %v531_v32 = vmul.f32 %v1416_v24, %v515_v4  ;;  %v532_v29 = vmul.f32 %v1416_v24, %v506_v60 }
 0x1a4   : > { %v546_v33 = vpop.permute.xlu0 %545  ;;  %v686_v34 = vpop.permute.xlu1 %685  ;;  %v537_v27 = vadd.f32 %v531_v32, %v482_v39  ;;  %v538_v43 = vadd.f32 %v532_v29, %v483_v1  ;;  %v832_v32 = vadd.f32 %v826_v40, %v783_v56  ;;  %v833_v29 = vadd.f32 %v827_v36, %v784_v7 }
 0x1a5   : > { %v555_v53 = vsel %vm553_vm3, %v546_v33, %v548_v41  ;;  %v564_v46 = vsel %vm553_vm3, 0.0, %v546_v33  ;;  %v693_v24 = vsel %vm691_vm10, %v1576_v54, %v686_v34  ;;  %v702_v54 = vsel %vm691_vm10, %v686_v34, 0.0 }
 0x1a6   : > { %v572_v47 = vsel %vm1589_vm7, %v564_v46, 0.0  ;;  %v573_v57 = vsel %vm1598_vm9, %v555_v53, 0.0  ;;  %v706_v44 = vsel %vm1589_vm7, %v693_v24, 0.0  ;;  %v707_v10 = vsel %vm1598_vm9, %v702_v54, 0.0 }
 0x1a7   : > { %v590_v49 = vmul.f32 %v1438_v35, %v572_v47  ;;  %v591_v41 = vmul.f32 %v1438_v35, %v573_v57  ;;  %v724_v33 = vmul.f32 %v1512_v8, %v706_v44  ;;  %v725_v34 = vmul.f32 %v1512_v8, %v707_v10 }
 0x1a8   : > { %v605_v45 = vpop.permute.xlu0 %604  ;;  %v741_v5 = vpop.permute.xlu1 %740  ;;  %v888_v47 = vadd.f32 %v882_v55, %v833_v29 }
 0x1a9   : > { %v614_v14 = vsel %vm612_vm6, %v605_v45, %v607_v48  ;;  %v623_v52 = vsel %vm612_vm6, 0.0, %v605_v45  ;;  %v596_v35 = vadd.f32 %v590_v49, %v537_v27  ;;  %v748_v16 = vsel %vm746_vm11, %v1580_v58, %v741_v5 }
 0x1aa   : > { %v627_v30 = vsel %vm1582_vm5, %v623_v52, 0.0  ;;  %v628_v9 = vsel %vm1594_vm8, %v614_v14, 0.0  ;;  %v597_v51 = vadd.f32 %v591_v41, %v538_v43  ;;  %v757_v4 = vsel %vm746_vm11, %v741_v5, 0.0 }
 0x1ab   : > { %v645_v42 = vmul.f32 %v1420_v26, %v627_v30  ;;  %v646_v60 = vmul.f32 %v1420_v26, %v628_v9  ;;  %v881_v48 = vmul.f32 %v1556_v18, %v863_v20  ;;  %v761_v58 = vsel %vm1582_vm5, %v748_v16, 0.0 }
 0x1ac   : > { %v796_v31 = vpop.permute.xlu1 %795  ;;  %v762_v26 = vsel %vm1594_vm8, %v757_v4, 0.0  ;;  %v779_v46 = vmul.f32 %v1530_v13, %v761_v58  ;;  %v439_v1 = vpop.permute.xlu0 %438 }
 0x1ad   : > { %v651_v50 = vadd.f32 %v645_v42, %v596_v35  ;;  %v652_v59 = vadd.f32 %v646_v60, %v597_v51  ;;  %v803_v39 = vsel %vm801_vm12, %v1587_v2, %v796_v31  ;;  %v887_v53 = vadd.f32 %v881_v48, %v832_v32 }
 0x1ae   : > { %v812_v56 = vsel %vm801_vm12, %v796_v31, 0.0  ;;  %v780_v40 = vmul.f32 %v1530_v13, %v762_v26  ;;  %v912_v13 = vadd.f32 %v1566_v21, %v888_v47 }
 0x1af   : > { %v675_v18 = vadd.f32 %v1458_v61, %v651_v50  ;;  %v676_v0 = vadd.f32 %v1460_v63, %v652_v59  ;;  %v828_v63 = vmul.f32 %v1550_v17, %v803_v39  ;;  %v829_v41 = vmul.f32 %v1550_v17, %v812_v56 }
 0x1b0   : > { %v845_v7 = vpop.permute.xlu1 %844  ;;  %v911_v27 = vadd.f32 %v1566_v21, %v887_v53  ;;  %v501_v54 = vpop.permute.xlu0 %500  ;;  %v918_v35 = vmax.f32 %v912_v13, 0.0 }
 0x1b1   : > { %v730_v57 = vadd.f32 %v724_v33, %v675_v18  ;;  %v731_v24 = vadd.f32 %v725_v34, %v676_v0  ;;  %v852_v61 = vsel %vm850_vm13, %v1609_v38, %v845_v7  ;;  %v861_v8 = vsel %vm850_vm13, %v845_v7, 0.0 }
 0x1b2   : > { %v865_v2 = vsel %vm1589_vm7, %v852_v61, 0.0  ;;  %v866_v20 = vsel %vm1598_vm9, %v861_v8, 0.0  ;;  %v917_v9 = vmax.f32 %v911_v27, 0.0  ;;  %v924_v60 = vmin.f32 %v918_v35, 6.0  ;;  %v1881_v35 = vld [vmem:[#allocation8_spill] sm:$0xff] }
 0x1b3   : > { %v785_v36 = vadd.f32 %v779_v46, %v730_v57  ;;  %v786_v49 = vadd.f32 %v780_v40, %v731_v24  ;;  %v883_v45 = vmul.f32 %v1560_v19, %v865_v2  ;;  %v884_v5 = vmul.f32 %v1560_v19, %v866_v20 }
 0x1b4   : > { %v688_v6 = vpop.permute.xlu1 %687  ;;  %v550_v21 = vpop.permute.xlu0 %549  ;;  %v923_v48 = vmin.f32 %v917_v9, 6.0  ;;  %v516_v29 = vsel %vm504_vm4, 0.0, %v501_v54 }
 0x1b5   : > { %v834_v38 = vadd.f32 %v828_v63, %v785_v36  ;;  %v835_v43 = vadd.f32 %v829_v41, %v786_v49  ;;  %v565_v32 = vsel %vm553_vm3, 0.0, %v550_v21 }
 0x1b6   : > { %v574_v53 = vsel %vm1589_vm7, %v565_v32, 0.0 }
 0x1b7   : > { %v889_v44 = vadd.f32 %v883_v45, %v834_v38  ;;  %v890_v14 = vadd.f32 %v884_v5, %v835_v43  ;;  %v592_v40 = vmul.f32 %v1418_v25, %v574_v53  ;;  %v1879_v38 = vld [vmem:[#allocation7_spill] sm:$0xff] }
 0x1b8   : > { %v1728_v52 = vpop.permute.xlu1 %846  ;;  %v609_v59 = vpop.permute.xlu0 %608  ;;  %v672_v43 = vmul.f32 %v1879_v38, %v1528_v12 }
 0x1b9   : > { %v914_v17 = vadd.f32 %v1572_v23, %v890_v14  ;;  %v913_v30 = vadd.f32 %v1572_v23, %v889_v44  ;;  %v454_v23 = vsel %vm442_vm2, 0.0, %v439_v1  ;;  %v624_v34 = vsel %vm612_vm6, 0.0, %v609_v59  ;;  %v1880_v44 = vld [vmem:[#allocation12_spill] sm:$0xff] }
 0x1ba   : > { %v463_v39 = vsel %vm1582_vm5, %v454_v23, 0.0  ;;  %v629_v47 = vsel %vm1582_vm5, %v624_v34, 0.0 }
 0x1bb   : > { %v920_v16 = vmax.f32 %v914_v17, 0.0  ;;  %v919_v51 = vmax.f32 %v913_v30, 0.0  ;;  %v484_v24 = vmul.f32 %v1570_v22, %v463_v39  ;;  %v1884_v39 = vld [vmem:[#allocation11_spill] sm:$0xff] }
 0x1bc   : > { %v441_v42 = vpop.permute.xlu1 %440 }
 0x1bd   : > { %v926_v4 = vmin.f32 %v920_v16, 6.0  ;;  %v925_v55 = vmin.f32 %v919_v51, 6.0  ;;  %v445_v50 = vsel %vm442_vm2, %v439_v1, %v441_v42  ;;  %v533_v1 = vmul.f32 %v1442_v37, %v516_v29  ;;  %v1882_v42 = vld [vmem:[#allocation9_spill] sm:$0xff] }
 0x1be   : > { %v464_v33 = vsel %vm1594_vm8, %v445_v50, 0.0 }
 0x1bf   : > { %v930_v19 = vpack.c.bf16 %v926_v4, %v924_v60  ;;  %v929_v10 = vpack.c.bf16 %v925_v55, %v923_v48  ;;  %v485_v56 = vmul.f32 %v1570_v22, %v464_v33  ;;  %v539_v2 = vadd.f32 %v533_v1, %v484_v24 }
 0x1c0   : > { %v503_v31 = vpop.permute.xlu1 %502 }
 0x1c1   : > { %951 = vmatprep.subr.bf16.mxu1 %v930_v19  ;;  %v507_v58 = vsel %vm504_vm4, %v501_v54, %v503_v31  ;;  %v598_v20 = vadd.f32 %v592_v40, %v539_v2 }
 0x1c2   : > { %952 = vmatpush1.bf16.msra.mxu1 %v929_v10  ;;  %v534_v18 = vmul.f32 %v1442_v37, %v507_v58  ;;  %v647_v37 = vmul.f32 %v1424_v28, %v629_v47 }
 0x1c4   : > { %v552_v26 = vpop.permute.xlu1 %551  ;;  %v540_v61 = vadd.f32 %v534_v18, %v485_v56  ;;  %v653_v54 = vadd.f32 %v647_v37, %v598_v20 }
 0x1c5   : > { %v556_v0 = vsel %vm553_vm3, %v550_v21, %v552_v26 }
 0x1c6   : > { %v575_v46 = vsel %vm1598_vm9, %v556_v0, 0.0 }
 0x1c7   : > { %v593_v7 = vmul.f32 %v1418_v25, %v575_v46  ;;  %v743_v25 = vpop.permute.xlu0 %742 }
 0x1c8   : > { %v611_v57 = vpop.permute.xlu1 %610 }
 0x1c9   : > { %v615_v63 = vsel %vm612_vm6, %v609_v59, %v611_v57  ;;  %v599_v36 = vadd.f32 %v593_v7, %v540_v61 }
 0x1ca   : > { %v630_v8 = vsel %vm1594_vm8, %v615_v63, 0.0 }
 0x1cb   : > { %v648_v49 = vmul.f32 %v1424_v28, %v630_v8  ;;  %v671_v28 = vmul.f32 %v1879_v38, %v1880_v44  ;;  %v798_v48 = vpop.permute.xlu0 %797  ;;  %v933_v8 = vld [vmem:[%s1850_s5] sm:$0x3] }
 0x1cc   : > { %v690_v41 = vpop.permute.xlu1 %689 }
 0x1cd   : > { %v654_v13 = vadd.f32 %v648_v49, %v599_v36  ;;  %v694_v27 = vsel %vm691_vm10, %v688_v6, %v690_v41  ;;  %v703_v22 = vsel %vm691_vm10, %v690_v41, 0.0  ;;  %v677_v21 = vadd.f32 %v671_v28, %v653_v54 }
 0x1ce   : > { %v708_v45 = vsel %vm1589_vm7, %v694_v27, 0.0  ;;  %v709_v5 = vsel %vm1598_vm9, %v703_v22, 0.0 }
 0x1cf   : > { %v678_v14 = vadd.f32 %v672_v43, %v654_v13  ;;  %v726_v6 = vmul.f32 %v1881_v35, %v708_v45  ;;  %v727_v30 = vmul.f32 %v1881_v35, %v709_v5  ;;  %v1885_v13 = vld [vmem:[#allocation5_spill] sm:$0xff] }
 0x1d0   : > { %v745_v17 = vpop.permute.xlu1 %744 }
 0x1d1   : > { %v749_v9 = vsel %vm746_vm11, %v743_v25, %v745_v17  ;;  %v758_v12 = vsel %vm746_vm11, %v745_v17, 0.0  ;;  %v732_v19 = vadd.f32 %v726_v6, %v677_v21  ;;  %v733_v10 = vadd.f32 %v727_v30, %v678_v14  ;;  %v909_v7 = vpop.permute.xlu0 %908  ;;  %v1886_v25 = vld [vmem:[#allocation6_spill] sm:$0xff] }
 0x1d2   : > { %v763_v16 = vsel %vm1582_vm5, %v749_v9, 0.0  ;;  %v764_v51 = vsel %vm1594_vm8, %v758_v12, 0.0 }
 0x1d3   : > { %v781_v60 = vmul.f32 %v1882_v42, %v763_v16  ;;  %v782_v4 = vmul.f32 %v1882_v42, %v764_v51 }
 0x1d4   : > { %v800_v55 = vpop.permute.xlu1 %799 }
 0x1d5   : > { %v804_v31 = vsel %vm801_vm12, %v798_v48, %v800_v55  ;;  %v813_v50 = vsel %vm801_vm12, %v800_v55, 0.0  ;;  %v787_v59 = vadd.f32 %v781_v60, %v732_v19  ;;  %v788_v58 = vadd.f32 %v782_v4, %v733_v10  ;;  %v938_v2 = vpop.permute.xlu0 %937 }
 0x1d6   : > { %v830_v23 = vmul.f32 %v1883_v62, %v804_v31  ;;  %v831_v11 = vmul.f32 %v1883_v62, %v813_v50 }
 0x1d8   : > { %v849_v32 = vpop.permute.xlu1 %848  ;;  %v836_v18 = vadd.f32 %v830_v23, %v787_v59  ;;  %v837_v0 = vadd.f32 %v831_v11, %v788_v58 }
 0x1d9   : > { %v853_v29 = vsel %vm850_vm13, %v1728_v52, %v849_v32  ;;  %v862_v33 = vsel %vm850_vm13, %v849_v32, 0.0 }
 0x1da   : > { %v867_v26 = vsel %vm1589_vm7, %v853_v29, 0.0  ;;  %v868_v34 = vsel %vm1598_vm9, %v862_v33, 0.0 }
 0x1db   : > { %v885_v53 = vmul.f32 %v1884_v39, %v867_v26  ;;  %v886_v46 = vmul.f32 %v1884_v39, %v868_v34 }
 0x1dd   : > { %v891_v1 = vadd.f32 %v885_v53, %v836_v18  ;;  %v892_v56 = vadd.f32 %v886_v46, %v837_v0 }
 0x1df   : > { %v916_v47 = vadd.f32 %v909_v7, %v892_v56  ;;  %v915_v52 = vadd.f32 %v909_v7, %v891_v1 }
 0x1e1   : > { %v922_v57 = vmax.f32 %v916_v47, 0.0  ;;  %v921_v24 = vmax.f32 %v915_v52, 0.0 }
 0x1e3   : > { %v928_v40 = vmin.f32 %v922_v57, 6.0  ;;  %v927_v3 = vmin.f32 %v921_v24, 6.0 }
 0x1e5   : > { %v932_v61 = vpack.c.bf16 %v928_v40, %v928_v40  ;;  %v931_v15 = vpack.c.bf16 %v927_v3, %v927_v3 }
 0x1e7   : > { %1085 = vmatprep.subr.msk.bf16.mxu1 %vm944_vm14, %v932_v61  ;;  %v946_v63 = vsel %vm944_vm14, %v931_v15, 0 }
 0x1e8   : > { %954 = vmatpush1.bf16.msra.mxu1 %v946_v63 }
 0x1eb   : > { %1086 = vmatmul.mubr.msk.bf16.vlgmr.msra.gmra.mrb[0].mxu1 %vm940_vm15, %v933_v8 }
 0x2be   : > { %v985_v37 = vpop.f32.mrb[0].mxu1 }
 0x2bf   : > { %v986_v36 = vadd.f32 %v985_v37, %v938_v2  ;;  %v987_v49 = vpop.f32.mrb[1].mxu1 }
 0x2c0   : > { %v988_v41 = vadd.f32 %v987_v49, %v938_v2  ;;  %v989_v20 = vpop.f32.mrb[2].mxu1 }
 0x2c1   : > { %v992_v27 = vadd.f32 %v986_v36, %v1885_v13  ;;  %v990_v22 = vpop.f32.mrb[3].mxu1 }
 0x2c2   : > { %v993_v38 = vadd.f32 %v988_v41, %v1886_v25 }
 0x2c4   : > { %v996_v43 = vcombine.low %v992_v27, %v993_v38 }
 0x2c6   : > { %998 = vst [vmem:[%s271_s13] sm:$0xff] %v996_v43 }
 0x2c7   : > { %1186 = shalt.err (!%p1183_p3)
}
 0x2c8   : > { %s1187_s22 = scalar_lea.hbm %s1803_s17, 128  ;;  %s1191_s8 = scalar_lea.hbm %s1852_s7, 256 }
 0x2c9   : > { %p1188_p4 = scmp.ne.s32.totalorder %s1803_s17, %s1187_s22  ;;  %p1192_p9 = scmp.lt.u32.totalorder %s1803_s17, %s1852_s7 }
 0x2ca   : > { %p1193_p10 = scmp.lt.u32.totalorder %s1191_s8, %s1187_s22  ;;  %p1195_p12 = scmp.lt.u32.totalorder %s1187_s22, %s1803_s17 }
 0x2cb   : > { %p1189_p7 = pnand %p1188_p4, %p1333_p5 }
 0x2cc   : > { %p1194_p11 = por %p1193_p10, %p1192_p9 }
 0x2cd   : > { %p1190_p8 = pneg %p1189_p7 }
 0x2ce   : > { %p1196_p13 = por %p1195_p12, %p1194_p11 }
 0x2d0   : > { %p1197_p0 = pnand %p1196_p13, %p1190_p8 }
 0x2d2   : > { %1200 = shalt.err (!%p1197_p0)
}
 0x2d3   : > { %1094 = dma.vmem_to_hbm [thread:$0]  (%p1333_p5), %s1805_s14, 128, %s1803_s17, %s1000_s18  }
 0x2d4 PF: > { %p1100_p1 = scmp.ge.s32.totalorder %s1235_s27, 2  ;;  %s1026_s15 = sand.u32 1, %s1223_s24  }
 0x2d5   : > { %s1027_s16 = scalar_lea.sflag [#allocation3], %s1026_s15 }
 0x2d6   : > { %p1097_p2 = pnand %p1100_p1, %p1337_p6 }
 0x2d8   : > { %1218 = dma.done.wait (!%p1097_p2), %s1027_s16, 128  }
 0x2d9   : > { %1220 = vsyncadd (!%p1097_p2), %s1027_s16, 4294967168  ;;  %p17_p3 = scmp.ge.s32.totalorder %s1320_s30, 4   ;;  %s1887_s24 = smov %s1227_s25 }
 0x2da   : > { %s1888_s25 = smov %s1231_s26  ;;  %s1889_s26 = smov %s1331_s10 }
 0x2db   : > { %s1890_s27 = smov %s1320_s30  ;;  %19 = sbr.rel (!%p17_p3) target bundleno = 3 (0x3), region = 83 }
 0x2e2   :  { %1032 = vsyncpa [#allocation3], 1 }
 0x2e3   :  { %1034 = vsyncpa [#allocation3 + $0x1], 1 }

</bundles_post_ra>
